<compile_context>
chip_gen: v5e
topology: v5e:2x2
jax: 0.10.0
libtpu: 0.0.40
codegen_flags: <defaults>
</compile_context>

<pallas_src>
import jax
import jax.numpy as jnp
from jax.experimental import pallas as pl
from jax.experimental.pallas import tpu as pltpu


def _round_up(x, m):
    return (x + m - 1) // m * m


def _vmem_capacity_bytes():
    """Physical VMEM per TensorCore; falls back to the smallest modern part (v7x)."""
    try:
        cap = getattr(pltpu.get_tpu_info(), "vmem_capacity_bytes", None)
        if cap:
            return int(cap)
    except Exception:
        pass
    return 64 * 1024 * 1024


def cosine_utt_kernel(x1_ref, x2_ref, w_ref, b_ref, out_ref):
    """Fused (folded BN + linear) projection -> per-row cosine similarity."""
    w = w_ref[...]
    b = b_ref[...]                                              # (1, D_out) f32
    # Cast on the VPU right before the MXU (saves a full wrapper-side HBM pass).
    y1 = jnp.dot(x1_ref[...].astype(w.dtype), w,
                 preferred_element_type=jnp.float32) + b        # (TB, D_out) f32
    y2 = jnp.dot(x2_ref[...].astype(w.dtype), w,
                 preferred_element_type=jnp.float32) + b

    dot = jnp.sum(y1 * y2, axis=1, keepdims=True)               # (TB, 1)
    n1sq = jnp.sum(y1 * y1, axis=1, keepdims=True)
    n2sq = jnp.sum(y2 * y2, axis=1, keepdims=True)
    # Clamp each squared norm separately (their product can under/overflow in f32).
    eps = jnp.float32(1e-30)
    inv1 = jax.lax.rsqrt(jnp.maximum(n1sq, eps))                # EUP rsqrt (free slot)
    inv2 = jax.lax.rsqrt(jnp.maximum(n2sq, eps))
    out_ref[...] = dot * inv1 * inv2
    # TODO(synk): lane-dense (1, TB) output row via a column->row relayout.
    # Writeback here is only 4 B/row vs >= 4*D_in B/row of input traffic, so the
    # masked column store is noise for realistic D_in.


def fold_utt_params(bn_gamma, bn_beta, bn_mean, bn_var, w, bias,
                    eps=1e-5, compute_dtype=jnp.bfloat16, pad_out_multiple=None):
    """One-time fold of BatchNorm1d (eval) into the Linear weight/bias.

    Returns:
        w_fold: (D_in, D_out[_padded]) in `compute_dtype` (pre-transposed)
        b_fold: (1, D_out[_padded]) float32
    `pad_out_multiple` zero-pads extra output columns (they contribute 0 to the
    dot product and to both norms, so the cosine is unchanged); use 256 on
    v6e/v7x to keep the MXU's N dimension full for large models.
    """
    scale = (bn_gamma / jnp.sqrt(bn_var + eps)).astype(jnp.float32)     # (D_in,)
    shift = (bn_beta - bn_mean * scale).astype(jnp.float32)             # (D_in,)
    w_t = jnp.transpose(w).astype(jnp.float32)                          # (D_in, D_out)
    w_fold = scale[:, None] * w_t                                       # (D_in, D_out)
    b_fold = (shift @ w_t + bias.astype(jnp.float32)).reshape(1, -1)    # (1, D_out)
    if pad_out_multiple:
        d_out = w_fold.shape[1]
        pad = _round_up(d_out, pad_out_multiple) - d_out
        if pad:
            w_fold = jnp.pad(w_fold, ((0, 0), (0, pad)))
            b_fold = jnp.pad(b_fold, ((0, 0), (0, pad)))
    # TODO(synk): optional int8 (v5e/v6e) / fp8 (v7x) weight quantization with a
    # per-column scale applied in the f32 epilogue.
    return w_fold.astype(compute_dtype), b_fold


def _pick_block_rows(padded_rows, cap_rows):
    """Largest 16-aligned tile dividing `padded_rows` that fits `cap_rows`,
    preferring >= 2 grid steps so both v7x TensorCores get work."""
    n = padded_rows // 16
    divisors = [d for d in range(1, n + 1) if n % d == 0]
    fit = [d for d in divisors if 16 * d <= cap_rows]
    multi = [d for d in fit if n // d >= 2]
    if multi:
        return 16 * max(multi)
    if fit:
        return 16 * max(fit)
    return 16


def cosine_utt_forward(x1, x2, w_fold, b_fold, *, block_b=None,
                       single_buffer_params=True):
    """Cosine score between projected utterance embeddings. Returns shape (B,)."""
    B, D_in = x1.shape
    assert B >= 1 and x2.shape == (B, D_in)
    D_out = w_fold.shape[1]
    assert w_fold.shape[0] == D_in and b_fold.shape == (1, D_out)

    # Pad only to 16-row (sublane) alignment -- never up to a full batch tile.
    pb = _round_up(B, 16)
    if pb != B:
        pad = pb - B
        x1 = jnp.pad(x1, ((0, pad), (0, 0)))
        x2 = jnp.pad(x2, ((0, pad), (0, 0)))

    x_item = jnp.dtype(x1.dtype).itemsize
    w_item = jnp.dtype(w_fold.dtype).itemsize

    # VMEM accounting:
    #   resident: folded W (worst-case 2 buffers if single-buffering unsupported) + bias
    #   per row : x1+x2 tiles (2 inputs x 2 pipeline buffers) + f32 y1/y2 and the
    #             three elementwise-product temporaries + column output.
    capacity = _vmem_capacity_bytes()
    resident = 2 * D_in * D_out * w_item + 2 * D_out * 4
    per_row = 4 * D_in * x_item + 6 * D_out * 4 + 16
    if block_b is None:
        budget = int(0.70 * capacity)
        cap_rows = max(16, (budget - resident) // per_row)
    else:
        cap_rows = max(16, int(block_b))
    cap_rows = min(1024, (cap_rows // 16) * 16)
    tb = _pick_block_rows(pb, cap_rows)
    num_tiles = pb // tb

    vmem_limit = min(capacity,
                     max(32 * 1024 * 1024,
                         int(1.25 * (resident + tb * per_row)) + (2 << 20)))

    flops = 2 * 2 * pb * D_in * D_out + 8 * pb * D_out
    bytes_accessed = (2 * pb * D_in * x_item + D_in * D_out * w_item
                      + D_out * 4 + pb * 4)
    cost = pl.CostEstimate(flops=flops, transcendentals=2 * pb,
                           bytes_accessed=bytes_accessed)

    def build(single_buffer):
        const_kwargs = dict(pipeline_mode=pl.Buffered(1)) if single_buffer else {}
        return pl.pallas_call(
            cosine_utt_kernel,
            out_shape=jax.ShapeDtypeStruct((pb, 1), jnp.float32),
            grid=(num_tiles,),
            in_specs=[
                pl.BlockSpec((tb, D_in), lambda i: (i, 0)),        # x1 tile
                pl.BlockSpec((tb, D_in), lambda i: (i, 0)),        # x2 tile
                pl.BlockSpec((D_in, D_out), lambda i: (0, 0),      # W: VMEM-resident
                             **const_kwargs),
                pl.BlockSpec((1, D_out), lambda i: (0, 0),         # bias
                             **const_kwargs),
            ],
            out_specs=pl.BlockSpec((tb, 1), lambda i: (i, 0)),
            compiler_params=pltpu.CompilerParams(
                dimension_semantics=("parallel",),
                vmem_limit_bytes=int(vmem_limit)),
            cost_estimate=cost,
        )

    try:
        out = build(single_buffer_params)(x1, x2, w_fold, b_fold)
    except Exception:
        # pipeline_mode=pl.Buffered(1) not supported on this jax version ->
        # default double-buffered constant specs (correct, slightly more VMEM).
        out = build(False)(x1, x2, w_fold, b_fold)

    # torch's xs.squeeze_() -> shape (B,)
    return out[:B, 0]


def reference_forward(x1, x2, bn_gamma, bn_beta, bn_mean, bn_var, w, bias, eps=1e-5):
    """Pure-JAX reference mirroring the PyTorch forward (unfused)."""
    def pre(x):
        xn = (x - bn_mean) / jnp.sqrt(bn_var + eps) * bn_gamma + bn_beta
        return xn @ w.T + bias
    y1, y2 = pre(x1), pre(x2)
    num = jnp.sum(y1 * y2, axis=1)
    return num / (jnp.linalg.norm(y1, axis=1) * jnp.linalg.norm(y2, axis=1))


if __name__ == "__main__":
    key = jax.random.PRNGKey(0)

    # ---- Case 1: small demo shapes (B=8, D_in=32, D_out=32) --------------------
    B, D_in, D_out = 8, 32, 32
    k1, k2, k3, k4, k5, k6, k7 = jax.random.split(key, 7)
    x1 = jax.random.normal(k1, (B, D_in), dtype=jnp.float32)
    x2 = jax.random.normal(k2, (B, D_in), dtype=jnp.float32)
    bn_gamma = 1.0 + 0.1 * jax.random.normal(k3, (D_in,), dtype=jnp.float32)
    bn_beta = 0.1 * jax.random.normal(k4, (D_in,), dtype=jnp.float32)
    bn_mean = 0.05 * jax.random.normal(k5, (D_in,), dtype=jnp.float32)
    bn_var = jnp.abs(1.0 + 0.1 * jax.random.normal(k6, (D_in,), dtype=jnp.float32))
    w = jax.random.normal(k7, (D_out, D_in), dtype=jnp.float32) / jnp.sqrt(D_in)
    bias = 0.01 * jnp.arange(D_out, dtype=jnp.float32)

    ref = reference_forward(x1, x2, bn_gamma, bn_beta, bn_mean, bn_var, w, bias)

    # f32 path: close to the unfused reference.
    w_f32, b_f32 = fold_utt_params(bn_gamma, bn_beta, bn_mean, bn_var, w, bias,
                                   compute_dtype=jnp.float32)
    out_f32 = jax.block_until_ready(cosine_utt_forward(x1, x2, w_f32, b_f32))
    assert out_f32.shape == (B,), out_f32.shape
    assert jnp.allclose(out_f32, ref, atol=1e-5, rtol=1e-5), (out_f32, ref)

    # bf16 production path (x cast to bf16 inside the kernel, f32 accumulation).
    w_bf16, b_bf16 = fold_utt_params(bn_gamma, bn_beta, bn_mean, bn_var, w, bias,
                                     compute_dtype=jnp.bfloat16)
    out_bf16 = jax.block_until_ready(cosine_utt_forward(x1, x2, w_bf16, b_bf16))
    assert out_bf16.shape == (B,), out_bf16.shape
    assert jnp.allclose(out_bf16, ref, atol=3e-2, rtol=3e-2), (out_bf16, ref)

    # ---- Case 2: ragged batch + multi-step grid (B=40 -> pad to 48, 3 tiles) ----
    B2, D_in2, D_out2 = 40, 64, 48
    j1, j2, j3, j4, j5, j6, j7 = jax.random.split(jax.random.PRNGKey(1), 7)
    x1b = jax.random.normal(j1, (B2, D_in2), dtype=jnp.float32)
    x2b = jax.random.normal(j2, (B2, D_in2), dtype=jnp.float32)
    g2 = 1.0 + 0.1 * jax.random.normal(j3, (D_in2,), dtype=jnp.float32)
    b2 = 0.1 * jax.random.normal(j4, (D_in2,), dtype=jnp.float32)
    m2 = 0.05 * jax.random.normal(j5, (D_in2,), dtype=jnp.float32)
    v2 = jnp.abs(1.0 + 0.1 * jax.random.normal(j6, (D_in2,), dtype=jnp.float32))
    w2 = jax.random.normal(j7, (D_out2, D_in2), dtype=jnp.float32) / jnp.sqrt(D_in2)
    bias2 = 0.01 * jnp.arange(D_out2, dtype=jnp.float32)

    ref2 = reference_forward(x1b, x2b, g2, b2, m2, v2, w2, bias2)
    w2_f32, b2_f32 = fold_utt_params(g2, b2, m2, v2, w2, bias2,
                                     compute_dtype=jnp.float32)
    out2 = jax.block_until_ready(
        cosine_utt_forward(x1b, x2b, w2_f32, b2_f32, block_b=16))
    assert out2.shape == (B2,), out2.shape
    assert jnp.allclose(out2, ref2, atol=1e-5, rtol=1e-5), (out2, ref2)

    print("KERNEL_OK")
</pallas_src>

<mosaic_0001>
module attributes {stable_mosaic.version = 11 : i64} {
  func.func @cosine_utt_kernel(%arg0: i32, %arg1: memref<16x32xf32, #tpu.memory_space<vmem>>, %arg2: memref<16x32xf32, #tpu.memory_space<vmem>>, %arg3: memref<32x32xf32, #tpu.memory_space<vmem>>, %arg4: memref<1x32xf32, #tpu.memory_space<vmem>>, %arg5: memref<16x1xf32, #tpu.memory_space<vmem>>) attributes {dimension_semantics = [#tpu.dimension_semantics<parallel>], iteration_bounds = array<i64: 1>, scalar_prefetch = 0 : i64, scratch_operands = 0 : i64, tpu.core_type = #tpu.core_type<tc>, window_params = [{transform_indices = @transform_0, window_bounds = array<i64: 16, 32>}, {transform_indices = @transform_1, window_bounds = array<i64: 16, 32>}, {pipeline_mode = #tpu.pipeline_mode<synchronous>, transform_indices = @transform_2, window_bounds = array<i64: 32, 32>}, {pipeline_mode = #tpu.pipeline_mode<synchronous>, transform_indices = @transform_3, window_bounds = array<i64: 1, 32>}, {transform_indices = @transform_4, window_bounds = array<i64: 16, 1>}]} {
    %c0 = arith.constant 0 : index
    %c0_0 = arith.constant 0 : index
    %0 = vector.load %arg3[%c0, %c0_0] : memref<32x32xf32, #tpu.memory_space<vmem>>, vector<32x32xf32>
    %c0_1 = arith.constant 0 : index
    %c0_2 = arith.constant 0 : index
    %1 = vector.load %arg4[%c0_1, %c0_2] : memref<1x32xf32, #tpu.memory_space<vmem>>, vector<1x32xf32>
    %c0_3 = arith.constant 0 : index
    %c0_4 = arith.constant 0 : index
    %2 = vector.load %arg1[%c0_3, %c0_4] : memref<16x32xf32, #tpu.memory_space<vmem>>, vector<16x32xf32>
    %cst = arith.constant dense<0.000000e+00> : vector<16x32xf32>
    %3 = tpu.matmul %2, %0, %cst {dimension_numbers = #tpu.dot_dimension_numbers<[1], [0], [0], [1], [0, 0, 1, 1], [], []>} : vector<16x32xf32>, vector<32x32xf32>, vector<16x32xf32> -> vector<16x32xf32>
    %4 = vector.broadcast %1 : vector<1x32xf32> to vector<16x32xf32>
    %5 = arith.addf %3, %4 : vector<16x32xf32>
    %c0_5 = arith.constant 0 : index
    %c0_6 = arith.constant 0 : index
    %6 = vector.load %arg2[%c0_5, %c0_6] : memref<16x32xf32, #tpu.memory_space<vmem>>, vector<16x32xf32>
    %cst_7 = arith.constant dense<0.000000e+00> : vector<16x32xf32>
    %7 = tpu.matmul %6, %0, %cst_7 {dimension_numbers = #tpu.dot_dimension_numbers<[1], [0], [0], [1], [0, 0, 1, 1], [], []>} : vector<16x32xf32>, vector<32x32xf32>, vector<16x32xf32> -> vector<16x32xf32>
    %8 = vector.broadcast %1 : vector<1x32xf32> to vector<16x32xf32>
    %9 = arith.addf %7, %8 : vector<16x32xf32>
    %10 = arith.mulf %5, %9 : vector<16x32xf32>
    %cst_8 = arith.constant dense<0.000000e+00> : vector<16xf32>
    %11 = vector.multi_reduction <add>, %10, %cst_8 [1] : vector<16x32xf32> to vector<16xf32>
    %12 = vector.shape_cast %11 : vector<16xf32> to vector<16x1xf32>
    %13 = arith.mulf %5, %5 : vector<16x32xf32>
    %cst_9 = arith.constant dense<0.000000e+00> : vector<16xf32>
    %14 = vector.multi_reduction <add>, %13, %cst_9 [1] : vector<16x32xf32> to vector<16xf32>
    %15 = vector.shape_cast %14 : vector<16xf32> to vector<16x1xf32>
    %16 = arith.mulf %9, %9 : vector<16x32xf32>
    %cst_10 = arith.constant dense<0.000000e+00> : vector<16xf32>
    %17 = vector.multi_reduction <add>, %16, %cst_10 [1] : vector<16x32xf32> to vector<16xf32>
    %18 = vector.shape_cast %17 : vector<16xf32> to vector<16x1xf32>
    %cst_11 = arith.constant 1.000000e-30 : f32
    %19 = vector.broadcast %cst_11 : f32 to vector<16x1xf32>
    %20 = arith.maximumf %15, %19 : vector<16x1xf32>
    %21 = math.rsqrt %20 : vector<16x1xf32>
    %cst_12 = arith.constant 1.000000e-30 : f32
    %22 = vector.broadcast %cst_12 : f32 to vector<16x1xf32>
    %23 = arith.maximumf %18, %22 : vector<16x1xf32>
    %24 = math.rsqrt %23 : vector<16x1xf32>
    %25 = arith.mulf %12, %21 : vector<16x1xf32>
    %26 = arith.mulf %25, %24 : vector<16x1xf32>
    %c0_13 = arith.constant 0 : index
    %c0_14 = arith.constant 0 : index
    %27 = vector.load %arg5[%c0_13, %c0_14] : memref<16x1xf32, #tpu.memory_space<vmem>>, vector<16x1xf32>
    tpu.vector_store %arg5[%c0_13, %c0_14], %26 {strides = array<i32>} : memref<16x1xf32, #tpu.memory_space<vmem>>, vector<16x1xf32>,
    return
  }
  func.func @transform_0(%arg0: i32) -> (i32, i32) {
    %c0_i32 = arith.constant 0 : i32
    %c0_i32_0 = arith.constant 0 : i32
    return %arg0, %c0_i32 : i32, i32
  }
  func.func @transform_1(%arg0: i32) -> (i32, i32) {
    %c0_i32 = arith.constant 0 : i32
    %c0_i32_0 = arith.constant 0 : i32
    return %arg0, %c0_i32 : i32, i32
  }
  func.func @transform_2(%arg0: i32) -> (i32, i32) {
    %c0_i32 = arith.constant 0 : i32
    %c0_i32_0 = arith.constant 0 : i32
    %c0_i32_1 = arith.constant 0 : i32
    return %c0_i32, %c0_i32_0 : i32, i32
  }
  func.func @transform_3(%arg0: i32) -> (i32, i32) {
    %c0_i32 = arith.constant 0 : i32
    %c0_i32_0 = arith.constant 0 : i32
    %c0_i32_1 = arith.constant 0 : i32
    return %c0_i32, %c0_i32_0 : i32, i32
  }
  func.func @transform_4(%arg0: i32) -> (i32, i32) {
    %c0_i32 = arith.constant 0 : i32
    %c0_i32_0 = arith.constant 0 : i32
    return %arg0, %c0_i32 : i32, i32
  }
}

module attributes {stable_mosaic.version = 11 : i64} {
  func.func @cosine_utt_kernel(%arg0: i32, %arg1: memref<16x32xf32, #tpu.memory_space<vmem>>, %arg2: memref<16x32xf32, #tpu.memory_space<vmem>>, %arg3: memref<32x32xf32, #tpu.memory_space<vmem>>, %arg4: memref<1x32xf32, #tpu.memory_space<vmem>>, %arg5: memref<16x1xf32, #tpu.memory_space<vmem>>) attributes {dimension_semantics = [#tpu.dimension_semantics<parallel>], iteration_bounds = array<i64: 1>, scalar_prefetch = 0 : i64, scratch_operands = 0 : i64, tpu.core_type = #tpu.core_type<tc>, window_params = [{transform_indices = @transform_0, window_bounds = array<i64: 16, 32>}, {transform_indices = @transform_1, window_bounds = array<i64: 16, 32>}, {pipeline_mode = #tpu.pipeline_mode<synchronous>, transform_indices = @transform_2, window_bounds = array<i64: 32, 32>}, {pipeline_mode = #tpu.pipeline_mode<synchronous>, transform_indices = @transform_3, window_bounds = array<i64: 1, 32>}, {transform_indices = @transform_4, window_bounds = array<i64: 16, 1>}]} {
    %c0 = arith.constant 0 : index
    %c0_0 = arith.constant 0 : index
    %0 = vector.load %arg3[%c0, %c0_0] : memref<32x32xf32, #tpu.memory_space<vmem>>, vector<32x32xf32>
    %c0_1 = arith.constant 0 : index
    %c0_2 = arith.constant 0 : index
    %1 = vector.load %arg4[%c0_1, %c0_2] : memref<1x32xf32, #tpu.memory_space<vmem>>, vector<1x32xf32>
    %c0_3 = arith.constant 0 : index
    %c0_4 = arith.constant 0 : index
    %2 = vector.load %arg1[%c0_3, %c0_4] : memref<16x32xf32, #tpu.memory_space<vmem>>, vector<16x32xf32>
    %cst = arith.constant dense<0.000000e+00> : vector<16x32xf32>
    %3 = tpu.matmul %2, %0, %cst {dimension_numbers = #tpu.dot_dimension_numbers<[1], [0], [0], [1], [0, 0, 1, 1], [], []>} : vector<16x32xf32>, vector<32x32xf32>, vector<16x32xf32> -> vector<16x32xf32>
    %4 = vector.broadcast %1 : vector<1x32xf32> to vector<16x32xf32>
    %5 = arith.addf %3, %4 : vector<16x32xf32>
    %c0_5 = arith.constant 0 : index
    %c0_6 = arith.constant 0 : index
    %6 = vector.load %arg2[%c0_5, %c0_6] : memref<16x32xf32, #tpu.memory_space<vmem>>, vector<16x32xf32>
    %cst_7 = arith.constant dense<0.000000e+00> : vector<16x32xf32>
    %7 = tpu.matmul %6, %0, %cst_7 {dimension_numbers = #tpu.dot_dimension_numbers<[1], [0], [0], [1], [0, 0, 1, 1], [], []>} : vector<16x32xf32>, vector<32x32xf32>, vector<16x32xf32> -> vector<16x32xf32>
    %8 = vector.broadcast %1 : vector<1x32xf32> to vector<16x32xf32>
    %9 = arith.addf %7, %8 : vector<16x32xf32>
    %10 = arith.mulf %5, %9 : vector<16x32xf32>
    %cst_8 = arith.constant dense<0.000000e+00> : vector<16xf32>
    %11 = vector.multi_reduction <add>, %10, %cst_8 [1] : vector<16x32xf32> to vector<16xf32>
    %12 = vector.shape_cast %11 : vector<16xf32> to vector<16x1xf32>
    %13 = arith.mulf %5, %5 : vector<16x32xf32>
    %cst_9 = arith.constant dense<0.000000e+00> : vector<16xf32>
    %14 = vector.multi_reduction <add>, %13, %cst_9 [1] : vector<16x32xf32> to vector<16xf32>
    %15 = vector.shape_cast %14 : vector<16xf32> to vector<16x1xf32>
    %16 = arith.mulf %9, %9 : vector<16x32xf32>
    %cst_10 = arith.constant dense<0.000000e+00> : vector<16xf32>
    %17 = vector.multi_reduction <add>, %16, %cst_10 [1] : vector<16x32xf32> to vector<16xf32>
    %18 = vector.shape_cast %17 : vector<16xf32> to vector<16x1xf32>
    %cst_11 = arith.constant 1.000000e-30 : f32
    %19 = vector.broadcast %cst_11 : f32 to vector<16x1xf32>
    %20 = arith.maximumf %15, %19 : vector<16x1xf32>
    %21 = math.rsqrt %20 : vector<16x1xf32>
    %cst_12 = arith.constant 1.000000e-30 : f32
    %22 = vector.broadcast %cst_12 : f32 to vector<16x1xf32>
    %23 = arith.maximumf %18, %22 : vector<16x1xf32>
    %24 = math.rsqrt %23 : vector<16x1xf32>
    %25 = arith.mulf %12, %21 : vector<16x1xf32>
    %26 = arith.mulf %25, %24 : vector<16x1xf32>
    %c0_13 = arith.constant 0 : index
    %c0_14 = arith.constant 0 : index
    %27 = vector.load %arg5[%c0_13, %c0_14] : memref<16x1xf32, #tpu.memory_space<vmem>>, vector<16x1xf32>
    tpu.vector_store %arg5[%c0_13, %c0_14], %26 {strides = array<i32>} : memref<16x1xf32, #tpu.memory_space<vmem>>, vector<16x1xf32>,
    return
  }
  func.func @transform_0(%arg0: i32) -> (i32, i32) {
    %c0_i32 = arith.constant 0 : i32
    %c0_i32_0 = arith.constant 0 : i32
    return %arg0, %c0_i32 : i32, i32
  }
  func.func @transform_1(%arg0: i32) -> (i32, i32) {
    %c0_i32 = arith.constant 0 : i32
    %c0_i32_0 = arith.constant 0 : i32
    return %arg0, %c0_i32 : i32, i32
  }
  func.func @transform_2(%arg0: i32) -> (i32, i32) {
    %c0_i32 = arith.constant 0 : i32
    %c0_i32_0 = arith.constant 0 : i32
    %c0_i32_1 = arith.constant 0 : i32
    return %c0_i32, %c0_i32_0 : i32, i32
  }
  func.func @transform_3(%arg0: i32) -> (i32, i32) {
    %c0_i32 = arith.constant 0 : i32
    %c0_i32_0 = arith.constant 0 : i32
    %c0_i32_1 = arith.constant 0 : i32
    return %c0_i32, %c0_i32_0 : i32, i32
  }
  func.func @transform_4(%arg0: i32) -> (i32, i32) {
    %c0_i32 = arith.constant 0 : i32
    %c0_i32_0 = arith.constant 0 : i32
    return %arg0, %c0_i32 : i32, i32
  }
}

</mosaic_0001>

<bundles_post_ra>
// kernel: tpu_custom_call.1
= control target key start
LH: loop header
LB: loop body
LE: loop exit
PB: predicated region body
PF: predicated region fallthrough
CT: control target
= control target key end

     0   :  { %9 = vsyncpa [#allocation3], 0  ;;  %s378_s0 = inlined_call_operand.hbm [shape: f32[16,32], index: 0, kind: input, shape index: {}]   ;;  %s379_s1 = inlined_call_operand.hbm [shape: f32[16,32], index: 1, kind: input, shape index: {}]   ;;  %s380_s2 = inlined_call_operand.hbm [shape: f32[32,32], index: 2, kind: input, shape index: {}]   ;;  %s381_s3 = inlined_call_operand.vmem [shape: f32[1,32], index: 3, kind: input, shape index: {}]   ;;  %s382_s4 = inlined_call_operand.vmem [shape: f32[16,1], index: 4, kind: output, shape index: {}]  }
   0x1   :  { %10 = vsyncpa [#allocation5], 0  ;;  %s28_s17 = sshll.u32 %s379_s1, 4  ;;  %s318_s18 = smov [#allocation4]   ;;  %s29_s17 = int_to_ptr.hbm [resolvable:$true] %s28_s17 }
   0x2   :  { %s30_s19 = sshll.u32 %s318_s18, 4  ;;  %s15_s22 = sshll.u32 %s378_s0, 4  ;;  %s31_s19 = int_to_ptr.vmem [resolvable:$true] %s30_s19  ;;  %s16_s22 = int_to_ptr.hbm [resolvable:$true] %s15_s22 }
   0x3   :  { %s319_s23 = smov 128   ;;  %s320_s24 = smov 8  }
   0x4   :  { %36 = dma.hbm_to_vmem [thread:$0]  %s29_s17, 256, %s31_s19, [#allocation5], %s319_s23, %s319_s23, %s320_s24  }
   0x5   :  { %s321_s25 = smov [#allocation2]   ;;  %s41_s29 = sshll.u32 %s380_s2, 4  ;;  %s42_s29 = int_to_ptr.hbm [resolvable:$true] %s41_s29 }
   0x6   :  { %s17_s26 = sshll.u32 %s321_s25, 4  ;;  %s322_s1 = smov [#allocation6]   ;;  %s18_s26 = int_to_ptr.vmem [resolvable:$true] %s17_s26 }
   0x7   :  { %23 = dma.hbm_to_vmem [thread:$0]  %s16_s22, 256, %s18_s26, [#allocation3], %s319_s23, %s319_s23, %s320_s24  }
   0x8   :  { %s43_s30 = sshll.u32 %s322_s1, 4  ;;  %s44_s30 = int_to_ptr.vmem [resolvable:$true] %s43_s30 }
   0x9   :  { %49 = dma.hbm_to_vmem [thread:$0]  %s42_s29, 512, %s44_s30, [#allocation5], %s319_s23, %s319_s23, %s320_s24  }
   0xa   :  { %314 = dma.done.wait [#allocation3], 256  }
   0xb   :  { %315 = vsyncadd [#allocation3], 4294967040 }
   0xc   :  { %316 = dma.done.wait [#allocation5], 768  }
   0xd   :  { %317 = vsyncadd [#allocation5], 4294966528  ;;  %v67_v0 = vld [vmem:[#allocation6 + $0x18] sm:$0xff]  ;;  %v66_v1 = vld [vmem:[#allocation6 + $0x10] sm:$0xff]  ;;  %vm74_vm0 = vcmask 261120   ;;  %vm207_vm7 = vcmask 7168  }
   0xe   :  { %93 = vmatpush.msra.mxu0 %v67_v0  ;;  %124 = vmatpush.msra.mxu1 %v67_v0  ;;  %v65_v2 = vld [vmem:[#allocation6 + $0x8] sm:$0xff]  ;;  %v64_v3 = vld [vmem:[#allocation6] sm:$0xff]  ;;  %v104_v5 = vld [vmem:[#allocation4] sm:$0xff] }
   0xf   :  { %220 = vmatpush.msra.mxu2 %v67_v0  ;;  %224 = vmatpush.msra.mxu3 %v67_v0  ;;  %v69_v4 = vld [vmem:[#allocation2] sm:$0xff]  ;;  %v70_v6 = vld [vmem:[#allocation2 + $0x8] sm:$0xff]  ;;  %v105_v7 = vld [vmem:[#allocation4 + $0x8] sm:$0xff] }
  0x10   :  { %94 = vmatpush.msra.mxu0 %v66_v1  ;;  %125 = vmatpush.msra.mxu1 %v66_v1  ;;  %v233_v8 = vld [vmem:[%s381_s3] ss:$0 sm:$0xff] }
  0x11   :  { %221 = vmatpush.msra.mxu2 %v66_v1  ;;  %225 = vmatpush.msra.mxu3 %v66_v1 }
  0x12   :  { %95 = vmatpush.msra.mxu0 %v65_v2  ;;  %126 = vmatpush.msra.mxu1 %v65_v2 }
  0x13   :  { %222 = vmatpush.msra.mxu2 %v65_v2  ;;  %226 = vmatpush.msra.mxu3 %v65_v2 }
  0x14   :  { %96 = vmatpush.msra.mxu0 %v64_v3  ;;  %127 = vmatpush.msra.mxu1 %v64_v3 }
  0x15   :  { %216 = vmatmul.msk.f32.vlgmr.msra.gmra.mxu0 %vm74_vm0, %v69_v4  ;;  %218 = vmatmul.msk.f32.vlgmr.msra.gmra.mxu1 %vm74_vm0, %v104_v5 }
  0x16   :  { %223 = vmatpush.msra.mxu2 %v64_v3  ;;  %227 = vmatpush.msra.mxu3 %v64_v3 }
  0x17   :  { %217 = vmatmul.msk.f32.vlgmr.msra.gmra.mxu2 %vm74_vm0, %v70_v6  ;;  %219 = vmatmul.msk.f32.vlgmr.msra.gmra.mxu3 %vm74_vm0, %v105_v7 }
  0x92   :  { %v98_v9 = vpop.f32.mrf.mxu0  ;;  %v129_v10 = vpop.f32.mrf.mxu1 }
  0x93   :  { %v99_v11 = vadd.f32 %v233_v8, %v98_v9  ;;  %v130_v12 = vadd.f32 %v233_v8, %v129_v10 }
  0x95   :  { %v151_v13 = vmul.f32 %v130_v12, %v130_v12  ;;  %v143_v14 = vmul.f32 %v99_v11, %v99_v11  ;;  %v135_v15 = vmul.f32 %v130_v12, %v99_v11 }
  0x97   :  { %v153_v16 = vsel %vm74_vm0, %v151_v13, 0.0  ;;  %v145_v17 = vsel %vm74_vm0, %v143_v14, 0.0  ;;  %v137_v18 = vsel %vm74_vm0, %v135_v15, 0.0 }
  0x98   :  { %154 = vadd.xlane.f32.xlu1 %v153_v16  ;;  %146 = vadd.xlane.f32.xlu0 %v145_v17 }
  0x99   :  { %138 = vadd.xlane.f32.xlu2 %v137_v18 }
  0x9a   :  { %v101_v19 = vpop.f32.mrf.mxu2  ;;  %v132_v20 = vpop.f32.mrf.mxu3 }
  0x9b   :  { %v102_v21 = vadd.f32 %v233_v8, %v101_v19  ;;  %v133_v22 = vadd.f32 %v233_v8, %v132_v20 }
  0x9d   :  { %v152_v23 = vmul.f32 %v133_v22, %v133_v22  ;;  %v144_v24 = vmul.f32 %v102_v21, %v102_v21  ;;  %v136_v25 = vmul.f32 %v133_v22, %v102_v21 }
  0x9f   :  { %v156_v26 = vsel %vm74_vm0, %v152_v23, 0.0  ;;  %v148_v27 = vsel %vm74_vm0, %v144_v24, 0.0  ;;  %v140_v28 = vsel %vm74_vm0, %v136_v25, 0.0 }
  0xa0   :  { %157 = vadd.xlane.f32.xlu1 %v156_v26  ;;  %149 = vadd.xlane.f32.xlu0 %v148_v27 }
  0xa1   :  { %141 = vadd.xlane.f32.xlu2 %v140_v28 }
 0x10b   :  { %v155_v29 = vpop.xlane.xlu1 %154  ;;  %v147_v30 = vpop.xlane.xlu0 %146 }
 0x10c   :  { %v181_v31 = vmax.f32 %v155_v29, 1e-30  ;;  %v159_v32 = vmax.f32 %v147_v30, 1e-30  ;;  %v139_v52 = vpop.xlane.xlu2 %138 }
 0x10e   :  { %234 = vrsqrt.f32 %v181_v31  ;;  %vm167_vm2 = vweird.f32 %v159_v32  ;;  %vm189_vm5 = vweird.f32 %v181_v31 }
 0x10f   :  { %236 = vrsqrt.f32 %v159_v32 }
 0x113   :  { %v158_v33 = vpop.xlane.xlu1 %157  ;;  %v150_v34 = vpop.xlane.xlu0 %149 }
 0x114   :  { %v235_v35 = vpop.eup %234  ;;  %v182_v36 = vmax.f32 %v158_v33, 1e-30  ;;  %v160_v37 = vmax.f32 %v150_v34, 1e-30  ;;  %v142_v3 = vpop.xlane.xlu2 %141 }
 0x115   :  { %v237_v38 = vpop.eup %236  ;;  %v184_v39 = vmul.f32 %v235_v35, %v181_v31  ;;  %vm190_vm3 = vweird.f32 %v235_v35 }
 0x116   :  { %v162_v40 = vmul.f32 %v237_v38, %v159_v32  ;;  %238 = vrsqrt.f32 %v182_v36  ;;  %vm168_vm1 = vweird.f32 %v237_v38  ;;  %vm191_vm6 = vmor %vm189_vm5, %vm190_vm3  ;;  %vm177_vm10 = vweird.f32 %v160_v37 }
 0x117   :  { %v185_v41 = vmul.f32 %v235_v35, %v184_v39  ;;  %240 = vrsqrt.f32 %v160_v37  ;;  %vm169_vm4 = vmor %vm167_vm2, %vm168_vm1  ;;  %vm199_vm12 = vweird.f32 %v182_v36 }
 0x118   :  { %v163_v42 = vmul.f32 %v237_v38, %v162_v40 }
 0x119   :  { %v186_v43 = vmul.f32 0.5, %v185_v41 }
 0x11a   :  { %v164_v44 = vmul.f32 0.5, %v163_v42 }
 0x11b   :  { %v187_v45 = vsub.f32 1.5, %v186_v43 }
 0x11c   :  { %v239_v46 = vpop.eup %238  ;;  %v165_v47 = vsub.f32 1.5, %v164_v44 }
 0x11d   :  { %v241_v48 = vpop.eup %240  ;;  %v194_v49 = vmul.f32 %v239_v46, %v182_v36  ;;  %v188_v51 = vmul.f32 %v235_v35, %v187_v45  ;;  %vm200_vm9 = vweird.f32 %v239_v46 }
 0x11e   :  { %v166_v50 = vmul.f32 %v237_v38, %v165_v47  ;;  %v172_v53 = vmul.f32 %v241_v48, %v160_v37  ;;  %vm178_vm8 = vweird.f32 %v241_v48  ;;  %vm201_vm13 = vmor %vm199_vm12, %vm200_vm9 }
 0x11f   :  { %v195_v54 = vmul.f32 %v239_v46, %v194_v49  ;;  %v192_v59 = vsel %vm191_vm6, %v235_v35, %v188_v51  ;;  %vm179_vm11 = vmor %vm177_vm10, %vm178_vm8 }
 0x120   :  { %v170_v55 = vsel %vm169_vm4, %v237_v38, %v166_v50  ;;  %v173_v56 = vmul.f32 %v241_v48, %v172_v53 }
 0x121   :  { %v203_v57 = vmul.f32 %v170_v55, %v139_v52  ;;  %v196_v58 = vmul.f32 0.5, %v195_v54 }
 0x122   :  { %v174_v60 = vmul.f32 0.5, %v173_v56 }
 0x123   :  { %v205_v61 = vmul.f32 %v203_v57, %v192_v59  ;;  %v197_v62 = vsub.f32 1.5, %v196_v58 }
 0x124   :  { %v175_v63 = vsub.f32 1.5, %v174_v60 }
 0x125   :  { %208 = vst.msk [vmem:[%s382_s4] sm:$0xff] %vm207_vm7, %v205_v61  ;;  %v198_v1 = vmul.f32 %v239_v46, %v197_v62 }
 0x126   :  { %v176_v0 = vmul.f32 %v241_v48, %v175_v63 }
 0x127   :  { %v202_v5 = vsel %vm201_vm13, %v239_v46, %v198_v1 }
 0x128   :  { %v180_v2 = vsel %vm179_vm11, %v241_v48, %v176_v0 }
 0x129   :  { %v204_v4 = vmul.f32 %v180_v2, %v142_v3 }
 0x12b   :  { %v206_v6 = vmul.f32 %v204_v4, %v202_v5 }
 0x12d   :  { %209 = vst.msk [vmem:[%s382_s4 + $0x8] sm:$0xff] %vm207_vm7, %v206_v6 }
 0x12e   :  { %214 = vsyncpa [#allocation3], 1 }
 0x12f   :  { %215 = vsyncpa [#allocation5], 1 }

// kernel: tpu_custom_call.1
= control target key start
LH: loop header
LB: loop body
LE: loop exit
PB: predicated region body
PF: predicated region fallthrough
CT: control target
= control target key end

     0   :  { %9 = vsyncpa [#allocation3], 0  ;;  %s378_s0 = inlined_call_operand.hbm [shape: f32[16,32], index: 0, kind: input, shape index: {}]   ;;  %s379_s1 = inlined_call_operand.hbm [shape: f32[16,32], index: 1, kind: input, shape index: {}]   ;;  %s380_s2 = inlined_call_operand.hbm [shape: f32[32,32], index: 2, kind: input, shape index: {}]   ;;  %s381_s3 = inlined_call_operand.vmem [shape: f32[1,32], index: 3, kind: input, shape index: {}]   ;;  %s382_s4 = inlined_call_operand.vmem [shape: f32[16,1], index: 4, kind: output, shape index: {}]  }
   0x1   :  { %10 = vsyncpa [#allocation5], 0  ;;  %s28_s17 = sshll.u32 %s379_s1, 4  ;;  %s318_s18 = smov [#allocation4]   ;;  %s29_s17 = int_to_ptr.hbm [resolvable:$true] %s28_s17 }
   0x2   :  { %s30_s19 = sshll.u32 %s318_s18, 4  ;;  %s15_s22 = sshll.u32 %s378_s0, 4  ;;  %s31_s19 = int_to_ptr.vmem [resolvable:$true] %s30_s19  ;;  %s16_s22 = int_to_ptr.hbm [resolvable:$true] %s15_s22 }
   0x3   :  { %s319_s23 = smov 128   ;;  %s320_s24 = smov 8  }
   0x4   :  { %36 = dma.hbm_to_vmem [thread:$0]  %s29_s17, 256, %s31_s19, [#allocation5], %s319_s23, %s319_s23, %s320_s24  }
   0x5   :  { %s321_s25 = smov [#allocation2]   ;;  %s41_s29 = sshll.u32 %s380_s2, 4  ;;  %s42_s29 = int_to_ptr.hbm [resolvable:$true] %s41_s29 }
   0x6   :  { %s17_s26 = sshll.u32 %s321_s25, 4  ;;  %s322_s1 = smov [#allocation6]   ;;  %s18_s26 = int_to_ptr.vmem [resolvable:$true] %s17_s26 }
   0x7   :  { %23 = dma.hbm_to_vmem [thread:$0]  %s16_s22, 256, %s18_s26, [#allocation3], %s319_s23, %s319_s23, %s320_s24  }
   0x8   :  { %s43_s30 = sshll.u32 %s322_s1, 4  ;;  %s44_s30 = int_to_ptr.vmem [resolvable:$true] %s43_s30 }
   0x9   :  { %49 = dma.hbm_to_vmem [thread:$0]  %s42_s29, 512, %s44_s30, [#allocation5], %s319_s23, %s319_s23, %s320_s24  }
   0xa   :  { %314 = dma.done.wait [#allocation3], 256  }
   0xb   :  { %315 = vsyncadd [#allocation3], 4294967040 }
   0xc   :  { %316 = dma.done.wait [#allocation5], 768  }
   0xd   :  { %317 = vsyncadd [#allocation5], 4294966528  ;;  %v67_v0 = vld [vmem:[#allocation6 + $0x18] sm:$0xff]  ;;  %v66_v1 = vld [vmem:[#allocation6 + $0x10] sm:$0xff]  ;;  %vm74_vm0 = vcmask 261120   ;;  %vm207_vm7 = vcmask 7168  }
   0xe   :  { %93 = vmatpush.msra.mxu0 %v67_v0  ;;  %124 = vmatpush.msra.mxu1 %v67_v0  ;;  %v65_v2 = vld [vmem:[#allocation6 + $0x8] sm:$0xff]  ;;  %v64_v3 = vld [vmem:[#allocation6] sm:$0xff]  ;;  %v104_v5 = vld [vmem:[#allocation4] sm:$0xff] }
   0xf   :  { %220 = vmatpush.msra.mxu2 %v67_v0  ;;  %224 = vmatpush.msra.mxu3 %v67_v0  ;;  %v69_v4 = vld [vmem:[#allocation2] sm:$0xff]  ;;  %v70_v6 = vld [vmem:[#allocation2 + $0x8] sm:$0xff]  ;;  %v105_v7 = vld [vmem:[#allocation4 + $0x8] sm:$0xff] }
  0x10   :  { %94 = vmatpush.msra.mxu0 %v66_v1  ;;  %125 = vmatpush.msra.mxu1 %v66_v1  ;;  %v233_v8 = vld [vmem:[%s381_s3] ss:$0 sm:$0xff] }
  0x11   :  { %221 = vmatpush.msra.mxu2 %v66_v1  ;;  %225 = vmatpush.msra.mxu3 %v66_v1 }
  0x12   :  { %95 = vmatpush.msra.mxu0 %v65_v2  ;;  %126 = vmatpush.msra.mxu1 %v65_v2 }
  0x13   :  { %222 = vmatpush.msra.mxu2 %v65_v2  ;;  %226 = vmatpush.msra.mxu3 %v65_v2 }
  0x14   :  { %96 = vmatpush.msra.mxu0 %v64_v3  ;;  %127 = vmatpush.msra.mxu1 %v64_v3 }
  0x15   :  { %216 = vmatmul.msk.f32.vlgmr.msra.gmra.mxu0 %vm74_vm0, %v69_v4  ;;  %218 = vmatmul.msk.f32.vlgmr.msra.gmra.mxu1 %vm74_vm0, %v104_v5 }
  0x16   :  { %223 = vmatpush.msra.mxu2 %v64_v3  ;;  %227 = vmatpush.msra.mxu3 %v64_v3 }
  0x17   :  { %217 = vmatmul.msk.f32.vlgmr.msra.gmra.mxu2 %vm74_vm0, %v70_v6  ;;  %219 = vmatmul.msk.f32.vlgmr.msra.gmra.mxu3 %vm74_vm0, %v105_v7 }
  0x92   :  { %v98_v9 = vpop.f32.mrf.mxu0  ;;  %v129_v10 = vpop.f32.mrf.mxu1 }
  0x93   :  { %v99_v11 = vadd.f32 %v233_v8, %v98_v9  ;;  %v130_v12 = vadd.f32 %v233_v8, %v129_v10 }
  0x95   :  { %v151_v13 = vmul.f32 %v130_v12, %v130_v12  ;;  %v143_v14 = vmul.f32 %v99_v11, %v99_v11  ;;  %v135_v15 = vmul.f32 %v130_v12, %v99_v11 }
  0x97   :  { %v153_v16 = vsel %vm74_vm0, %v151_v13, 0.0  ;;  %v145_v17 = vsel %vm74_vm0, %v143_v14, 0.0  ;;  %v137_v18 = vsel %vm74_vm0, %v135_v15, 0.0 }
  0x98   :  { %154 = vadd.xlane.f32.xlu1 %v153_v16  ;;  %146 = vadd.xlane.f32.xlu0 %v145_v17 }
  0x99   :  { %138 = vadd.xlane.f32.xlu2 %v137_v18 }
  0x9a   :  { %v101_v19 = vpop.f32.mrf.mxu2  ;;  %v132_v20 = vpop.f32.mrf.mxu3 }
  0x9b   :  { %v102_v21 = vadd.f32 %v233_v8, %v101_v19  ;;  %v133_v22 = vadd.f32 %v233_v8, %v132_v20 }
  0x9d   :  { %v152_v23 = vmul.f32 %v133_v22, %v133_v22  ;;  %v144_v24 = vmul.f32 %v102_v21, %v102_v21  ;;  %v136_v25 = vmul.f32 %v133_v22, %v102_v21 }
  0x9f   :  { %v156_v26 = vsel %vm74_vm0, %v152_v23, 0.0  ;;  %v148_v27 = vsel %vm74_vm0, %v144_v24, 0.0  ;;  %v140_v28 = vsel %vm74_vm0, %v136_v25, 0.0 }
  0xa0   :  { %157 = vadd.xlane.f32.xlu1 %v156_v26  ;;  %149 = vadd.xlane.f32.xlu0 %v148_v27 }
  0xa1   :  { %141 = vadd.xlane.f32.xlu2 %v140_v28 }
 0x10b   :  { %v155_v29 = vpop.xlane.xlu1 %154  ;;  %v147_v30 = vpop.xlane.xlu0 %146 }
 0x10c   :  { %v181_v31 = vmax.f32 %v155_v29, 1e-30  ;;  %v159_v32 = vmax.f32 %v147_v30, 1e-30  ;;  %v139_v52 = vpop.xlane.xlu2 %138 }
 0x10e   :  { %234 = vrsqrt.f32 %v181_v31  ;;  %vm167_vm2 = vweird.f32 %v159_v32  ;;  %vm189_vm5 = vweird.f32 %v181_v31 }
 0x10f   :  { %236 = vrsqrt.f32 %v159_v32 }
 0x113   :  { %v158_v33 = vpop.xlane.xlu1 %157  ;;  %v150_v34 = vpop.xlane.xlu0 %149 }
 0x114   :  { %v235_v35 = vpop.eup %234  ;;  %v182_v36 = vmax.f32 %v158_v33, 1e-30  ;;  %v160_v37 = vmax.f32 %v150_v34, 1e-30  ;;  %v142_v3 = vpop.xlane.xlu2 %141 }
 0x115   :  { %v237_v38 = vpop.eup %236  ;;  %v184_v39 = vmul.f32 %v235_v35, %v181_v31  ;;  %vm190_vm3 = vweird.f32 %v235_v35 }
 0x116   :  { %v162_v40 = vmul.f32 %v237_v38, %v159_v32  ;;  %238 = vrsqrt.f32 %v182_v36  ;;  %vm168_vm1 = vweird.f32 %v237_v38  ;;  %vm191_vm6 = vmor %vm189_vm5, %vm190_vm3  ;;  %vm177_vm10 = vweird.f32 %v160_v37 }
 0x117   :  { %v185_v41 = vmul.f32 %v235_v35, %v184_v39  ;;  %240 = vrsqrt.f32 %v160_v37  ;;  %vm169_vm4 = vmor %vm167_vm2, %vm168_vm1  ;;  %vm199_vm12 = vweird.f32 %v182_v36 }
 0x118   :  { %v163_v42 = vmul.f32 %v237_v38, %v162_v40 }
 0x119   :  { %v186_v43 = vmul.f32 0.5, %v185_v41 }
 0x11a   :  { %v164_v44 = vmul.f32 0.5, %v163_v42 }
 0x11b   :  { %v187_v45 = vsub.f32 1.5, %v186_v43 }
 0x11c   :  { %v239_v46 = vpop.eup %238  ;;  %v165_v47 = vsub.f32 1.5, %v164_v44 }
 0x11d   :  { %v241_v48 = vpop.eup %240  ;;  %v194_v49 = vmul.f32 %v239_v46, %v182_v36  ;;  %v188_v51 = vmul.f32 %v235_v35, %v187_v45  ;;  %vm200_vm9 = vweird.f32 %v239_v46 }
 0x11e   :  { %v166_v50 = vmul.f32 %v237_v38, %v165_v47  ;;  %v172_v53 = vmul.f32 %v241_v48, %v160_v37  ;;  %vm178_vm8 = vweird.f32 %v241_v48  ;;  %vm201_vm13 = vmor %vm199_vm12, %vm200_vm9 }
 0x11f   :  { %v195_v54 = vmul.f32 %v239_v46, %v194_v49  ;;  %v192_v59 = vsel %vm191_vm6, %v235_v35, %v188_v51  ;;  %vm179_vm11 = vmor %vm177_vm10, %vm178_vm8 }
 0x120   :  { %v170_v55 = vsel %vm169_vm4, %v237_v38, %v166_v50  ;;  %v173_v56 = vmul.f32 %v241_v48, %v172_v53 }
 0x121   :  { %v203_v57 = vmul.f32 %v170_v55, %v139_v52  ;;  %v196_v58 = vmul.f32 0.5, %v195_v54 }
 0x122   :  { %v174_v60 = vmul.f32 0.5, %v173_v56 }
 0x123   :  { %v205_v61 = vmul.f32 %v203_v57, %v192_v59  ;;  %v197_v62 = vsub.f32 1.5, %v196_v58 }
 0x124   :  { %v175_v63 = vsub.f32 1.5, %v174_v60 }
 0x125   :  { %208 = vst.msk [vmem:[%s382_s4] sm:$0xff] %vm207_vm7, %v205_v61  ;;  %v198_v1 = vmul.f32 %v239_v46, %v197_v62 }
 0x126   :  { %v176_v0 = vmul.f32 %v241_v48, %v175_v63 }
 0x127   :  { %v202_v5 = vsel %vm201_vm13, %v239_v46, %v198_v1 }
 0x128   :  { %v180_v2 = vsel %vm179_vm11, %v241_v48, %v176_v0 }
 0x129   :  { %v204_v4 = vmul.f32 %v180_v2, %v142_v3 }
 0x12b   :  { %v206_v6 = vmul.f32 %v204_v4, %v202_v5 }
 0x12d   :  { %209 = vst.msk [vmem:[%s382_s4 + $0x8] sm:$0xff] %vm207_vm7, %v206_v6 }
 0x12e   :  { %214 = vsyncpa [#allocation3], 1 }
 0x12f   :  { %215 = vsyncpa [#allocation5], 1 }

</bundles_post_ra>
